<compile_context>
chip_gen: v5e
topology: v5e:2x2
jax: 0.10.0
libtpu: 0.0.40
codegen_flags: <defaults>
</compile_context>

<pallas_src>
import functools
import math

import jax
import jax.numpy as jnp
from jax.experimental import pallas as pl
from jax.experimental.pallas import tpu as pltpu


def listnet_kernel(x_ref, w1_ref, b1_ref, w2_ref, b2_ref, o_ref, *,
                   use_bf16_matmul):
    x = x_ref[...]                                   # (tm, F)
    w1 = w1_ref[...]                                 # (F, H)
    if use_bf16_matmul:
        # bf16 operands, f32 accumulation on the MXU (v6e/v7x native bf16).
        x = x.astype(jnp.bfloat16)
        w1 = w1.astype(jnp.bfloat16)
    h = jnp.dot(x, w1, preferred_element_type=jnp.float32)    # (tm, H) f32
    h = jnp.maximum(h + b1_ref[...], 0.0)                     # bias + ReLU (f32, VPU)
    # Second Linear (H -> 1): VPU multiply + XLU lane reduce instead of a
    # width-1 MXU matmul.  b2 is a scalar living in SMEM.
    y = jnp.sum(h * w2_ref[...], axis=-1) + b2_ref[0, 0]      # (tm,)
    # Lane-dense store: one (1, tm) row per grid step.
    o_ref[...] = y.reshape(1, -1).astype(o_ref.dtype)


def _pick_tile(n):
    # Largest multiple-of-128 tile (capped at 512) that still leaves >= 2 grid
    # steps when N allows it (keeps both v7x TensorCores busy); 128 minimum so
    # the output row stays lane-dense.
    for cand in (512, 256, 128):
        if n >= 2 * cand:
            return cand
    return 128


@functools.partial(jax.jit, static_argnames=("tm", "use_bf16_matmul"))
def listnet_forward(x, w1, b1, w2, b2, *, tm=None, use_bf16_matmul=True):
    """ListNet forward: logits = Linear2(ReLU(Linear1(x))), returns (N, 1).

    x : (N, F)   w1 : (F, H)   b1 : (1, H)   w2 : (1, H)   b2 : (1, 1)
    (w1 is stored transposed vs. torch's nn.Linear; w2/b2 are in torch layout.)
    """
    N, F = x.shape
    H = w1.shape[1]
    if tm is None:
        tm = _pick_tile(N)

    # Pad ragged batch sizes up to a multiple of the tile (no hard assert).
    num_tiles = -(-N // tm)
    n_pad = num_tiles * tm
    if n_pad != N:
        x = jnp.pad(x, ((0, n_pad - N), (0, 0)))

    kernel = functools.partial(listnet_kernel, use_bf16_matmul=use_bf16_matmul)

    out_rows = pl.pallas_call(
        kernel,
        out_shape=jax.ShapeDtypeStruct((num_tiles, tm), x.dtype),
        grid_spec=pltpu.PrefetchScalarGridSpec(
            num_scalar_prefetch=0,
            grid=(num_tiles,),
            in_specs=[
                pl.BlockSpec((tm, F), lambda i: (i, 0)),    # x batch tile
                pl.BlockSpec((F, H), lambda i: (0, 0)),     # W1 (resident)
                pl.BlockSpec((1, H), lambda i: (0, 0)),     # b1
                pl.BlockSpec((1, H), lambda i: (0, 0)),     # W2 row (resident)
                pl.BlockSpec(memory_space=pltpu.MemorySpace.SMEM),  # b2 scalar
            ],
            # Lane-dense output: row i holds logits for rows [i*tm, (i+1)*tm).
            out_specs=pl.BlockSpec((1, tm), lambda i: (i, 0)),
        ),
        compiler_params=pltpu.CompilerParams(
            dimension_semantics=("parallel",),
            vmem_limit_bytes=32 * 1024 * 1024,   # fits v7x's 64 MiB physical VMEM
        ),
    )(x, w1, b1, w2, b2)

    # Back to the PyTorch logits shape (N, 1), dropping any padding rows.
    return out_rows.reshape(-1)[:N].reshape(N, 1)


def init_listnet_params(key, num_input_features, hidden_dim, dtype=jnp.float32):
    """Deterministic init mimicking torch.nn.Linear (U[-1/sqrt(fan_in), 1/sqrt(fan_in)])."""
    k1, k2, k3, k4 = jax.random.split(key, 4)
    bound1 = 1.0 / math.sqrt(num_input_features)
    bound2 = 1.0 / math.sqrt(hidden_dim)
    # W1 stored transposed vs. PyTorch (in, out) so the kernel does x @ W1.
    w1 = jax.random.uniform(k1, (num_input_features, hidden_dim),
                            minval=-bound1, maxval=bound1, dtype=dtype)
    b1 = jax.random.uniform(k2, (1, hidden_dim),
                            minval=-bound1, maxval=bound1, dtype=dtype)
    # W2 kept in PyTorch layout (out=1, in=H): used directly by the lane reduce.
    w2 = jax.random.uniform(k3, (1, hidden_dim),
                            minval=-bound2, maxval=bound2, dtype=dtype)
    b2 = jax.random.uniform(k4, (1, 1),
                            minval=-bound2, maxval=bound2, dtype=dtype)
    return w1, b1, w2, b2


if __name__ == "__main__":
    # Small shapes consistent with ListNet.forward: a list of N documents,
    # each with F features -> one logit per document.
    F = 32                # num_input_features
    H = 32                # hidden_dim

    key = jax.random.PRNGKey(0)
    kx1, kx2, kp = jax.random.split(key, 3)
    w1, b1, w2, b2 = init_listnet_params(kp, F, H)

    def ref_fn(xx):
        return jnp.maximum(xx @ w1 + b1, 0.0) @ w2.T + b2

    # Case 1: tile-aligned batch, default bf16-MXU path (loosened tolerance).
    N1 = 128
    x1 = jax.random.normal(kx1, (N1, F), dtype=jnp.float32)
    out1 = jax.block_until_ready(listnet_forward(x1, w1, b1, w2, b2))
    assert out1.shape == (N1, 1)
    assert jnp.allclose(out1, ref_fn(x1), atol=3e-2, rtol=3e-2), "bf16 path mismatch"

    # Case 2: ragged batch (exercises padding) on the exact f32 path.
    N2 = 100
    x2 = jax.random.normal(kx2, (N2, F), dtype=jnp.float32)
    out2 = jax.block_until_ready(
        listnet_forward(x2, w1, b1, w2, b2, use_bf16_matmul=False))
    assert out2.shape == (N2, 1)
    assert jnp.allclose(out2, ref_fn(x2), atol=1e-5, rtol=1e-5), "f32 path mismatch"

    print("KERNEL_OK")
</pallas_src>

<mosaic_0001>
module attributes {stable_mosaic.version = 11 : i64} {
  func.func @listnet_kernel(%arg0: i32, %arg1: memref<128x32xf32, #tpu.memory_space<vmem>>, %arg2: memref<32x32xf32, #tpu.memory_space<vmem>>, %arg3: memref<1x32xf32, #tpu.memory_space<vmem>>, %arg4: memref<1x32xf32, #tpu.memory_space<vmem>>, %arg5: memref<1x1xf32, #tpu.memory_space<smem>>, %arg6: memref<1x128xf32, #tpu.memory_space<vmem>>) attributes {dimension_semantics = [#tpu.dimension_semantics<parallel>], iteration_bounds = array<i64: 1>, scalar_prefetch = 0 : i64, scratch_operands = 0 : i64, tpu.core_type = #tpu.core_type<tc>, window_params = [{transform_indices = @transform_0, window_bounds = array<i64: 128, 32>}, {pipeline_mode = #tpu.pipeline_mode<synchronous>, transform_indices = @transform_1, window_bounds = array<i64: 32, 32>}, {pipeline_mode = #tpu.pipeline_mode<synchronous>, transform_indices = @transform_2, window_bounds = array<i64: 1, 32>}, {pipeline_mode = #tpu.pipeline_mode<synchronous>, transform_indices = @transform_3, window_bounds = array<i64: 1, 32>}, {transform_indices = @transform_4, window_bounds = array<i64: 1, 1>}, {transform_indices = @transform_5, window_bounds = array<i64: 1, 128>}]} {
    %c0 = arith.constant 0 : index
    %c0_0 = arith.constant 0 : index
    %0 = vector.load %arg1[%c0, %c0_0] : memref<128x32xf32, #tpu.memory_space<vmem>>, vector<128x32xf32>
    %c0_1 = arith.constant 0 : index
    %c0_2 = arith.constant 0 : index
    %1 = vector.load %arg2[%c0_1, %c0_2] : memref<32x32xf32, #tpu.memory_space<vmem>>, vector<32x32xf32>
    %2 = arith.truncf %0 : vector<128x32xf32> to vector<128x32xbf16>
    %3 = arith.truncf %1 : vector<32x32xf32> to vector<32x32xbf16>
    %cst = arith.constant dense<0.000000e+00> : vector<128x32xf32>
    %4 = tpu.matmul %2, %3, %cst {dimension_numbers = #tpu.dot_dimension_numbers<[1], [0], [0], [1], [0, 0, 1, 1], [], []>} : vector<128x32xbf16>, vector<32x32xbf16>, vector<128x32xf32> -> vector<128x32xf32>
    %c0_3 = arith.constant 0 : index
    %c0_4 = arith.constant 0 : index
    %5 = vector.load %arg3[%c0_3, %c0_4] : memref<1x32xf32, #tpu.memory_space<vmem>>, vector<1x32xf32>
    %6 = vector.broadcast %5 : vector<1x32xf32> to vector<128x32xf32>
    %7 = arith.addf %4, %6 : vector<128x32xf32>
    %cst_5 = arith.constant 0.000000e+00 : f32
    %8 = vector.broadcast %cst_5 : f32 to vector<128x32xf32>
    %9 = arith.maximumf %7, %8 : vector<128x32xf32>
    %c0_6 = arith.constant 0 : index
    %c0_7 = arith.constant 0 : index
    %10 = vector.load %arg4[%c0_6, %c0_7] : memref<1x32xf32, #tpu.memory_space<vmem>>, vector<1x32xf32>
    %11 = vector.broadcast %10 : vector<1x32xf32> to vector<128x32xf32>
    %12 = arith.mulf %9, %11 : vector<128x32xf32>
    %cst_8 = arith.constant dense<0.000000e+00> : vector<128xf32>
    %13 = vector.multi_reduction <add>, %12, %cst_8 [1] : vector<128x32xf32> to vector<128xf32>
    %c0_9 = arith.constant 0 : index
    %c0_10 = arith.constant 0 : index
    %14 = memref.load %arg5[%c0_9, %c0_10] : memref<1x1xf32, #tpu.memory_space<smem>>
    %15 = vector.broadcast %14 : f32 to vector<128xf32>
    %16 = arith.addf %13, %15 : vector<128xf32>
    %17 = vector.shape_cast %16 : vector<128xf32> to vector<1x128xf32>
    %c0_11 = arith.constant 0 : index
    %c0_12 = arith.constant 0 : index
    %18 = vector.load %arg6[%c0_11, %c0_12] : memref<1x128xf32, #tpu.memory_space<vmem>>, vector<1x128xf32>
    tpu.vector_store %arg6[%c0_11, %c0_12], %17 {strides = array<i32>} : memref<1x128xf32, #tpu.memory_space<vmem>>, vector<1x128xf32>,
    return
  }
  func.func @transform_0(%arg0: i32) -> (i32, i32) {
    %c0_i32 = arith.constant 0 : i32
    %c0_i32_0 = arith.constant 0 : i32
    return %arg0, %c0_i32 : i32, i32
  }
  func.func @transform_1(%arg0: i32) -> (i32, i32) {
    %c0_i32 = arith.constant 0 : i32
    %c0_i32_0 = arith.constant 0 : i32
    %c0_i32_1 = arith.constant 0 : i32
    return %c0_i32, %c0_i32_0 : i32, i32
  }
  func.func @transform_2(%arg0: i32) -> (i32, i32) {
    %c0_i32 = arith.constant 0 : i32
    %c0_i32_0 = arith.constant 0 : i32
    %c0_i32_1 = arith.constant 0 : i32
    return %c0_i32, %c0_i32_0 : i32, i32
  }
  func.func @transform_3(%arg0: i32) -> (i32, i32) {
    %c0_i32 = arith.constant 0 : i32
    %c0_i32_0 = arith.constant 0 : i32
    %c0_i32_1 = arith.constant 0 : i32
    return %c0_i32, %c0_i32_0 : i32, i32
  }
  func.func @transform_4(%arg0: i32) -> (i32, i32) {
    %c0_i32 = arith.constant 0 : i32
    %c0_i32_0 = arith.constant 0 : i32
    %c0_i32_1 = arith.constant 0 : i32
    return %c0_i32, %c0_i32_0 : i32, i32
  }
  func.func @transform_5(%arg0: i32) -> (i32, i32) {
    %c0_i32 = arith.constant 0 : i32
    %c0_i32_0 = arith.constant 0 : i32
    return %arg0, %c0_i32 : i32, i32
  }
}

</mosaic_0001>

<bundles_post_ra>
// kernel: listnet_forward.1
= control target key start
LH: loop header
LB: loop body
LE: loop exit
PB: predicated region body
PF: predicated region fallthrough
CT: control target
= control target key end

     0   :  { %vm57_vm0 = vcmask 261120   ;;  %s572_s0 = inlined_call_operand.vmem [shape: f32[128,32], index: 0, kind: input, shape index: {}]   ;;  %s573_s1 = inlined_call_operand.vmem [shape: f32[32,32], index: 1, kind: input, shape index: {}]   ;;  %s574_s2 = inlined_call_operand.vmem [shape: f32[1,32], index: 2, kind: input, shape index: {}]   ;;  %s575_s3 = inlined_call_operand.vmem [shape: f32[1,32], index: 3, kind: input, shape index: {}]   ;;  %s576_s4 = inlined_call_operand.<no memory space> [shape: f32[1,1], index: 4, kind: input, shape index: {}]   ;;  %s577_s5 = inlined_call_operand.hbm [shape: f32[1,128], index: 5, kind: output, shape index: {}]  }
   0x1   :  { %v41_v0 = vld [vmem:[%s573_s1 + $0x10] sm:$0xff]  ;;  %v42_v1 = vld [vmem:[%s573_s1 + $0x18] sm:$0xff]  ;;  %v39_v2 = vld [vmem:[%s573_s1] sm:$0xff] }
   0x2   :  { %v52_v3 = vpack.c.bf16 %v42_v1, %v41_v0  ;;  %v40_v4 = vld [vmem:[%s573_s1 + $0x8] sm:$0xff]  ;;  %v23_v5 = vld [vmem:[%s572_s0] sm:$0xff] }
   0x3   :  { %v24_v6 = vld [vmem:[%s572_s0 + $0x8] sm:$0xff]  ;;  %v51_v7 = vpack.c.bf16 %v40_v4, %v39_v2  ;;  %v27_v8 = vld [vmem:[%s572_s0 + $0x20] sm:$0xff] }
   0x4   :  { %88 = vmatpush.bf16.msra.mxu0 %v52_v3  ;;  %338 = vmatpush.bf16.msra.mxu1 %v52_v3  ;;  %v28_v9 = vld [vmem:[%s572_s0 + $0x28] sm:$0xff]  ;;  %v31_v10 = vld [vmem:[%s572_s0 + $0x40] sm:$0xff]  ;;  %v43_v14 = vpack.c.bf16 %v24_v6, %v23_v5 }
   0x5   :  { %339 = vmatpush.bf16.msra.mxu2 %v52_v3  ;;  %v32_v11 = vld [vmem:[%s572_s0 + $0x48] sm:$0xff]  ;;  %340 = vmatpush.bf16.msra.mxu3 %v52_v3  ;;  %v35_v12 = vld [vmem:[%s572_s0 + $0x60] sm:$0xff]  ;;  %v45_v15 = vpack.c.bf16 %v28_v9, %v27_v8 }
   0x6   :  { %v36_v13 = vld [vmem:[%s572_s0 + $0x68] sm:$0xff]  ;;  %v47_v16 = vpack.c.bf16 %v32_v11, %v31_v10 }
   0x7   :  { %v49_v17 = vpack.c.bf16 %v36_v13, %v35_v12 }
   0x8   :  { %89 = vmatpush.bf16.msra.mxu0 %v51_v7  ;;  %341 = vmatpush.bf16.msra.mxu1 %v51_v7 }
   0x9   :  { %11 = vsyncpa [#allocation4], 0  ;;  %342 = vmatpush.bf16.msra.mxu2 %v51_v7  ;;  %343 = vmatpush.bf16.msra.mxu3 %v51_v7  ;;  %v25_v18 = vld [vmem:[%s572_s0 + $0x10] sm:$0xff]  ;;  %v26_v19 = vld [vmem:[%s572_s0 + $0x18] sm:$0xff]  ;;  %vm254_vm1 = vcmask 130112   ;;  %vm258_vm2 = vcmask 195712  }
   0xa   :  { %v33_v20 = vld [vmem:[%s572_s0 + $0x50] sm:$0xff]  ;;  %v30_v22 = vld [vmem:[%s572_s0 + $0x38] sm:$0xff]  ;;  %v44_v26 = vpack.c.bf16 %v26_v19, %v25_v18  ;;  %v475_v30 = vld [vmem:[%s574_s2] ss:$0 sm:$0xff]  ;;  %vm262_vm3 = vcmask 261312   ;;  %vm266_vm4 = vcmask 326912  }
   0xb   :  { %330 = vmatmul.msk.bf16.vlgmr.msra.gmra.mxu0 %vm57_vm0, %v43_v14  ;;  %332 = vmatmul.msk.bf16.vlgmr.msra.gmra.mxu1 %vm57_vm0, %v45_v15  ;;  %v29_v21 = vld [vmem:[%s572_s0 + $0x30] sm:$0xff]  ;;  %v34_v23 = vld [vmem:[%s572_s0 + $0x58] sm:$0xff]  ;;  %v482_v35 = vld [vmem:[%s575_s3] ss:$0 sm:$0xff]  ;;  %vm270_vm5 = vcmask 392512   ;;  %vm274_vm6 = vcmask 458112  }
   0xc   :  { %334 = vmatmul.msk.bf16.vlgmr.msra.gmra.mxu2 %vm57_vm0, %v47_v16  ;;  %336 = vmatmul.msk.bf16.vlgmr.msra.gmra.mxu3 %vm57_vm0, %v49_v17  ;;  %v37_v24 = vld [vmem:[%s572_s0 + $0x70] sm:$0xff]  ;;  %v38_v25 = vld [vmem:[%s572_s0 + $0x78] sm:$0xff]  ;;  %v46_v27 = vpack.c.bf16 %v30_v22, %v29_v21  ;;  %v48_v28 = vpack.c.bf16 %v34_v23, %v33_v20  ;;  %vm278_vm7 = vcmask 523712   ;;  %vm282_vm8 = vcmask 589312   ;;  %s321_s12 = sshll.u32 %s577_s5, 4  ;;  %s322_s12 = int_to_ptr.hbm [resolvable:$true] %s321_s12 }
   0xd   :  { %v50_v29 = vpack.c.bf16 %v38_v25, %v37_v24  ;;  %vm286_vm9 = vcmask 654912   ;;  %vm290_vm10 = vcmask 720512   ;;  %vm294_vm11 = vcmask 786112  }
   0xe   :  { %vm298_vm12 = vcmask 851712   ;;  %vm302_vm13 = vcmask 917312   ;;  %vm306_vm14 = vcmask 982912   ;;  %vm310_vm15 = vcmask 1048512  }
  0x1b   :  { %331 = vmatmul.msk.bf16.gmra.mxu0 %vm57_vm0, %v44_v26  ;;  %333 = vmatmul.msk.bf16.gmra.mxu1 %vm57_vm0, %v46_v27 }
  0x1c   :  { %335 = vmatmul.msk.bf16.gmra.mxu2 %vm57_vm0, %v48_v28  ;;  %337 = vmatmul.msk.bf16.gmra.mxu3 %vm57_vm0, %v50_v29 }
  0x88   :  { %v91_v31 = vpop.f32.mrf.mxu0  ;;  %v101_v32 = vpop.f32.mrf.mxu1 }
  0x89   :  { %v92_v33 = vadd.f32 %v475_v30, %v91_v31  ;;  %v102_v34 = vadd.f32 %v475_v30, %v101_v32 }
  0x8b   :  { %v131_v36 = vmax.f32 %v92_v33, 0.0  ;;  %v135_v37 = vmax.f32 %v102_v34, 0.0 }
  0x8d   :  { %v155_v38 = vmul.f32 %v482_v35, %v135_v37  ;;  %v151_v39 = vmul.f32 %v482_v35, %v131_v36 }
  0x8f   :  { %v111_v40 = vpop.f32.mrf.mxu2  ;;  %v179_v41 = vsel %vm57_vm0, %v155_v38, 0.0  ;;  %v167_v42 = vsel %vm57_vm0, %v151_v39, 0.0  ;;  %v121_v43 = vpop.f32.mrf.mxu3 }
  0x90   :  { %v112_v44 = vadd.f32 %v475_v30, %v111_v40  ;;  %180 = vadd.xlane.f32.xlu2 %v179_v41  ;;  %v93_v45 = vpop.f32.mrf.mxu0  ;;  %168 = vadd.xlane.f32.xlu0 %v167_v42  ;;  %v103_v46 = vpop.f32.mrf.mxu1  ;;  %v122_v15 = vadd.f32 %v475_v30, %v121_v43 }
  0x91   :  { %v94_v47 = vadd.f32 %v475_v30, %v93_v45  ;;  %v104_v48 = vadd.f32 %v475_v30, %v103_v46 }
  0x92   :  { %v139_v49 = vmax.f32 %v112_v44, 0.0  ;;  %v143_v22 = vmax.f32 %v122_v15, 0.0 }
  0x93   :  { %v132_v50 = vmax.f32 %v94_v47, 0.0  ;;  %v136_v52 = vmax.f32 %v104_v48, 0.0 }
  0x94   :  { %v159_v51 = vmul.f32 %v482_v35, %v139_v49  ;;  %v163_v33 = vmul.f32 %v482_v35, %v143_v22 }
  0x95   :  { %v152_v53 = vmul.f32 %v482_v35, %v132_v50  ;;  %v156_v62 = vmul.f32 %v482_v35, %v136_v52 }
  0x96   :  { %v191_v54 = vsel %vm57_vm0, %v159_v51, 0.0  ;;  %v203_v39 = vsel %vm57_vm0, %v163_v33, 0.0 }
  0x97   :  { %v113_v55 = vpop.f32.mrf.mxu2  ;;  %v170_v56 = vsel %vm57_vm0, %v152_v53, 0.0  ;;  %v123_v57 = vpop.f32.mrf.mxu3  ;;  %v182_v3 = vsel %vm57_vm0, %v156_v62, 0.0 }
  0x98   :  { %v114_v58 = vadd.f32 %v475_v30, %v113_v55  ;;  %192 = vadd.xlane.f32.xlu2 %v191_v54  ;;  %v96_v59 = vpop.f32.mrf.mxu0  ;;  %171 = vadd.xlane.f32.xlu0 %v170_v56  ;;  %v106_v60 = vpop.f32.mrf.mxu1  ;;  %v124_v42 = vadd.f32 %v475_v30, %v123_v57  ;;  %v249_v55 = vlaneseq }
  0x99   :  { %v97_v61 = vadd.f32 %v475_v30, %v96_v59  ;;  %v107_v0 = vadd.f32 %v475_v30, %v106_v60 }
  0x9a   :  { %v140_v63 = vmax.f32 %v114_v58, 0.0  ;;  %v144_v46 = vmax.f32 %v124_v42, 0.0  ;;  %v530_v57 = vand.u32 127, %v249_v55  ;;  %v535_v58 = vstv %s576_s4  ;;  %s373_s4 = smov [#allocation3]  }
  0x9b   :  { %v133_v1 = vmax.f32 %v97_v61, 0.0  ;;  %v137_v5 = vmax.f32 %v107_v0, 0.0  ;;  %s319_s9 = sshll.u32 %s373_s4, 4  ;;  %s320_s9 = int_to_ptr.vmem [resolvable:$true] %s319_s9 }
  0x9c   :  { %v160_v2 = vmul.f32 %v482_v35, %v140_v63  ;;  %v164_v48 = vmul.f32 %v482_v35, %v144_v46  ;;  %v256_v60 = vadd.s32 4294967280, %v530_v57  ;;  %v276_v22 = vadd.s32 4294967240, %v530_v57 }
  0x9d   :  { %v153_v4 = vmul.f32 %v482_v35, %v133_v1  ;;  %v157_v13 = vmul.f32 %v482_v35, %v137_v5 }
  0x9e   :  { %v194_v11 = vsel %vm57_vm0, %v160_v2, 0.0  ;;  %v206_v49 = vsel %vm57_vm0, %v164_v48, 0.0  ;;  %v260_v2 = vadd.s32 4294967272, %v530_v57 }
  0x9f   :  { %v116_v6 = vpop.f32.mrf.mxu2  ;;  %v173_v7 = vsel %vm57_vm0, %v153_v4, 0.0  ;;  %v126_v8 = vpop.f32.mrf.mxu3  ;;  %v185_v18 = vsel %vm57_vm0, %v157_v13, 0.0 }
  0xa0   :  { %v117_v9 = vadd.f32 %v475_v30, %v116_v6  ;;  %183 = vadd.xlane.f32.xlu2 %v182_v3  ;;  %v98_v10 = vpop.f32.mrf.mxu0  ;;  %174 = vadd.xlane.f32.xlu1 %v173_v7  ;;  %v108_v24 = vpop.f32.mrf.mxu1  ;;  %v127_v25 = vadd.f32 %v475_v30, %v126_v8  ;;  %v264_v3 = vadd.s32 4294967264, %v530_v57 }
  0xa1   :  { %195 = vadd.xlane.f32.xlu0 %v194_v11  ;;  %v99_v14 = vadd.f32 %v475_v30, %v98_v10  ;;  %v109_v28 = vadd.f32 %v475_v30, %v108_v24 }
  0xa2   :  { %v141_v12 = vmax.f32 %v117_v9, 0.0  ;;  %v145_v31 = vmax.f32 %v127_v25, 0.0  ;;  %v268_v9 = vadd.s32 4294967256, %v530_v57  ;;  %v284_v25 = vadd.s32 4294967224, %v530_v57 }
  0xa3   :  { %v134_v19 = vmax.f32 %v99_v14, 0.0  ;;  %v138_v37 = vmax.f32 %v109_v28, 0.0 }
  0xa4   :  { %v161_v16 = vmul.f32 %v482_v35, %v141_v12  ;;  %v165_v40 = vmul.f32 %v482_v35, %v145_v31  ;;  %v288_v31 = vadd.s32 4294967216, %v530_v57 }
  0xa5   :  { %v154_v29 = vmul.f32 %v482_v35, %v134_v19  ;;  %v158_v43 = vmul.f32 %v482_v35, %v138_v37 }
  0xa6   :  { %v197_v17 = vsel %vm57_vm0, %v161_v16, 0.0  ;;  %v209_v44 = vsel %vm57_vm0, %v165_v40, 0.0 }
  0xa7   :  { %v118_v20 = vpop.f32.mrf.mxu2  ;;  %v128_v21 = vpop.f32.mrf.mxu3  ;;  %v176_v38 = vsel %vm57_vm0, %v154_v29, 0.0  ;;  %v188_v47 = vsel %vm57_vm0, %v158_v43, 0.0 }
  0xa8   :  { %v119_v23 = vadd.f32 %v475_v30, %v118_v20  ;;  %198 = vadd.xlane.f32.xlu1 %v197_v17  ;;  %v129_v27 = vadd.f32 %v475_v30, %v128_v21  ;;  %v272_v17 = vadd.s32 4294967248, %v530_v57 }
  0xa9   :  { %186 = vadd.xlane.f32.xlu0 %v185_v18 }
  0xaa   :  { %v142_v26 = vmax.f32 %v119_v23, 0.0  ;;  %v146_v36 = vmax.f32 %v129_v27, 0.0  ;;  %v280_v23 = vadd.s32 4294967232, %v530_v57 }
  0xac   :  { %v162_v32 = vmul.f32 %v482_v35, %v142_v26  ;;  %v166_v41 = vmul.f32 %v482_v35, %v146_v36  ;;  %v252_v35 = vadd.s32 4294967288, %v530_v57 }
  0xae   :  { %v200_v34 = vsel %vm57_vm0, %v162_v32, 0.0  ;;  %v212_v45 = vsel %vm57_vm0, %v166_v41, 0.0  ;;  %v296_v41 = vadd.s32 4294967200, %v530_v57 }
  0xaf   :  { %201 = vadd.xlane.f32.xlu2 %v200_v34  ;;  %v292_v34 = vadd.s32 4294967208, %v530_v57 }
  0xb0   :  { %177 = vadd.xlane.f32.xlu1 %v176_v38 }
  0xb1   :  { %204 = vadd.xlane.f32.xlu0 %v203_v39 }
  0xb7   :  { %210 = vadd.xlane.f32.xlu2 %v209_v44 }
  0xb8   :  { %189 = vadd.xlane.f32.xlu1 %v188_v47 }
  0xb9   :  { %213 = vadd.xlane.f32.xlu0 %v212_v45 }
  0xc0   :  { %207 = vadd.xlane.f32.xlu1 %v206_v49 }
 0x103   :  { %v169_v50 = vpop.xlane.xlu0 %168  ;;  %v181_v30 = vpop.xlane.xlu2 %180 }
 0x104   :  { %v217_v63 = vadd.f32 %v535_v58, %v169_v50  ;;  %v221_v4 = vadd.f32 %v535_v58, %v181_v30  ;;  %v300_v50 = vadd.s32 4294967192, %v530_v57 }
 0x106   :  { %v251_v7 = vperm.slane %v217_v63, %v530_v57  ;;  %v265_v13 = vperm.slane %v221_v4, %v264_v3 }
 0x10b   :  { %v172_v51 = vpop.xlane.xlu0 %171  ;;  %v193_v54 = vpop.xlane.xlu2 %192 }
 0x10c   :  { %v218_v59 = vadd.f32 %v535_v58, %v172_v51  ;;  %v225_v24 = vadd.f32 %v535_v58, %v193_v54  ;;  %v304_v51 = vadd.s32 4294967184, %v530_v57 }
 0x10e   :  { %v253_v1 = vperm.slane %v218_v59, %v252_v35  ;;  %v281_v38 = vperm.slane %v225_v24, %v280_v23 }
 0x110   :  { %v255_v10 = vsel %vm254_vm1, %v253_v1, %v251_v7 }
 0x113   :  { %v175_v52 = vpop.xlane.xlu1 %174  ;;  %v184_v0 = vpop.xlane.xlu2 %183 }
 0x114   :  { %v196_v53 = vpop.xlane.xlu0 %195  ;;  %v219_v61 = vadd.f32 %v535_v58, %v175_v52  ;;  %v222_v11 = vadd.f32 %v535_v58, %v184_v0  ;;  %v308_v52 = vadd.s32 4294967176, %v530_v57 }
 0x115   :  { %v226_v27 = vadd.f32 %v535_v58, %v196_v53 }
 0x116   :  { %v257_v5 = vperm.slane %v219_v61, %v256_v60  ;;  %v269_v21 = vperm.slane %v222_v11, %v268_v9 }
 0x117   :  { %v285_v40 = vperm.slane %v226_v27, %v284_v25 }
 0x118   :  { %v259_v14 = vsel %vm258_vm2, %v257_v5, %v255_v10 }
 0x11b   :  { %v199_v56 = vpop.xlane.xlu1 %198 }
 0x11c   :  { %v187_v62 = vpop.xlane.xlu0 %186  ;;  %v227_v32 = vadd.f32 %v535_v58, %v199_v56 }
 0x11d   :  { %v223_v18 = vadd.f32 %v535_v58, %v187_v62 }
 0x11e   :  { %v289_v44 = vperm.slane %v227_v32, %v288_v31 }
 0x11f   :  { %v273_v33 = vperm.slane %v223_v18, %v272_v17 }
 0x122   :  { %v202_v15 = vpop.xlane.xlu2 %201 }
 0x123   :  { %v178_v6 = vpop.xlane.xlu1 %177  ;;  %v228_v36 = vadd.f32 %v535_v58, %v202_v15 }
 0x124   :  { %v220_v8 = vadd.f32 %v535_v58, %v178_v6  ;;  %v205_v20 = vpop.xlane.xlu0 %204 }
 0x125   :  { %v229_v45 = vadd.f32 %v535_v58, %v205_v20  ;;  %v293_v48 = vperm.slane %v228_v36, %v292_v34 }
 0x126   :  { %v261_v12 = vperm.slane %v220_v8, %v260_v2 }
 0x127   :  { %v297_v59 = vperm.slane %v229_v45, %v296_v41 }
 0x128   :  { %v263_v16 = vsel %vm262_vm3, %v261_v12, %v259_v14 }
 0x129   :  { %v267_v19 = vsel %vm266_vm4, %v265_v13, %v263_v16 }
 0x12a   :  { %v271_v29 = vsel %vm270_vm5, %v269_v21, %v267_v19  ;;  %v211_v43 = vpop.xlane.xlu2 %210 }
 0x12b   :  { %v190_v26 = vpop.xlane.xlu1 %189  ;;  %v275_v39 = vsel %vm274_vm6, %v273_v33, %v271_v29  ;;  %v231_v30 = vadd.f32 %v535_v58, %v211_v43 }
 0x12c   :  { %v224_v28 = vadd.f32 %v535_v58, %v190_v26  ;;  %v214_v47 = vpop.xlane.xlu0 %213 }
 0x12d   :  { %v232_v55 = vadd.f32 %v535_v58, %v214_v47  ;;  %v305_v61 = vperm.slane %v231_v30, %v304_v51 }
 0x12e   :  { %v277_v37 = vperm.slane %v224_v28, %v276_v22 }
 0x12f   :  { %v309_v62 = vperm.slane %v232_v55, %v308_v52 }
 0x130   :  { %v279_v42 = vsel %vm278_vm7, %v277_v37, %v275_v39 }
 0x131   :  { %v283_v46 = vsel %vm282_vm8, %v281_v38, %v279_v42 }
 0x132   :  { %v287_v49 = vsel %vm286_vm9, %v285_v40, %v283_v46 }
 0x133   :  { %v208_v53 = vpop.xlane.xlu1 %207  ;;  %v291_v54 = vsel %vm290_vm10, %v289_v44, %v287_v49 }
 0x134   :  { %v230_v56 = vadd.f32 %v535_v58, %v208_v53  ;;  %v295_v35 = vsel %vm294_vm11, %v293_v48, %v291_v54 }
 0x135   :  { %v299_v57 = vsel %vm298_vm12, %v297_v59, %v295_v35 }
 0x136   :  { %v301_v60 = vperm.slane %v230_v56, %v300_v50 }
 0x138   :  { %v303_v63 = vsel %vm302_vm13, %v301_v60, %v299_v57 }
 0x139   :  { %v307_v0 = vsel %vm306_vm14, %v305_v61, %v303_v63 }
 0x13a   :  { %v311_v58 = vsel %vm310_vm15, %v309_v62, %v307_v0 }
 0x13b   :  { %313 = vst [vmem:[#allocation3] sm:$0x1] %v311_v58 }
 0x13c   :  { %324 = dma.vmem_to_hbm [thread:$0]  %s320_s9, 16, %s322_s12, [#allocation4]  }
 0x13d   :  { %371 = dma.done.wait [#allocation4], 16  }
 0x13e   :  { %372 = vsyncadd [#allocation4], 4294967280 }
 0x13f   :  { %329 = vsyncpa [#allocation4], 1 }

</bundles_post_ra>
